<compile_context>
chip_gen: v7x
topology: tpu7x:2x2x1
jax: 0.10.0
libtpu: 0.0.40
codegen_flags: <defaults>
</compile_context>

<pallas_src>
import jax
import jax.numpy as jnp
from jax.experimental import pallas as pl
from jax.experimental.pallas import tpu as pltpu

IN_DIM = 28 * 28      # 784
HID_DIM = 128
OUT_DIM = 10
OUT_PAD = 128         # lane-dense padded output width (multiple of 128)
TILE_B_MAX = 4096     # ~37 MiB working set with f32 x: fits v7x 64 MiB VMEM
SUBLANE = 16          # batch tiles kept multiples of 16 (bf16 output packing)


def _round_up(n, m):
    return ((n + m - 1) // m) * m


def _mlp_kernel(x_ref, w1_ref, b1_ref, w2_ref, b2_ref, o_ref):
    # x arrives as f32 (single HBM pass); cast to bf16 on the VPU so fc1 runs
    # at the native bf16 MXU rate with f32 accumulation.
    x_bf = x_ref[...].astype(jnp.bfloat16)
    h = jnp.dot(x_bf, w1_ref[...], preferred_element_type=jnp.float32)
    # bias + ReLU in f32 on the VPU.
    h = jnp.maximum(h + b1_ref[...], 0.0)
    # fc2 entirely in f32: tiny FLOPs, HBM-bound kernel, and it avoids a
    # second quantization of the hidden activation.
    out = jnp.dot(h, w2_ref[...], preferred_element_type=jnp.float32)
    # bf16 writeback halves output HBM bytes; wrapper casts back to f32.
    o_ref[...] = (out + b2_ref[...]).astype(o_ref.dtype)


def prepare_params(w1, b1, w2, b2):
    """One-time parameter prep, hoisted out of the per-forward-call path."""
    w1_bf = w1.astype(jnp.bfloat16)                               # (784, 128)
    b1_2d = b1.reshape(1, HID_DIM).astype(jnp.float32)            # (1, 128)
    # Lane-dense output: zero-pad fc2 to 128 output columns (kept in f32).
    w2_pad = jnp.zeros((HID_DIM, OUT_PAD), jnp.float32).at[:, :OUT_DIM].set(
        w2.astype(jnp.float32))                                   # (128, 128)
    b2_pad = jnp.zeros((1, OUT_PAD), jnp.float32).at[:, :OUT_DIM].set(
        b2.reshape(1, OUT_DIM).astype(jnp.float32))               # (1, 128)
    return w1_bf, b1_2d, w2_pad, b2_pad


def _choose_tile(batch):
    """Batch tile: multiple of 16, capped at TILE_B_MAX, and sized so the grid
    has >= 2 steps whenever possible (v7x dual-TensorCore split + pipelining)."""
    b16 = _round_up(max(batch, 1), SUBLANE)
    if b16 <= SUBLANE:
        return SUBLANE
    n_steps = max(2, pl.cdiv(b16, TILE_B_MAX))
    return _round_up(pl.cdiv(b16, n_steps), SUBLANE)


def simple_nn_forward(x, params):
    """x: any shape flattening to (-1, 784), f32. Returns (B, 10) f32 logits."""
    w1_bf, b1_2d, w2_pad, b2_pad = params
    B = x.size // IN_DIM
    x2d = x.reshape(B, IN_DIM).astype(jnp.float32)   # == torch x.view(-1, 784)

    tile_b = _choose_tile(B)
    B_pad = pl.cdiv(B, tile_b) * tile_b
    if B_pad != B:
        x2d = jnp.pad(x2d, ((0, B_pad - B), (0, 0)))

    out = pl.pallas_call(
        _mlp_kernel,
        out_shape=jax.ShapeDtypeStruct((B_pad, OUT_PAD), jnp.bfloat16),
        grid=(B_pad // tile_b,),
        in_specs=[
            pl.BlockSpec((tile_b, IN_DIM), lambda i: (i, 0)),    # x: streamed f32
            pl.BlockSpec((IN_DIM, HID_DIM), lambda i: (0, 0)),   # w1: resident
            pl.BlockSpec((1, HID_DIM), lambda i: (0, 0)),        # b1: resident
            pl.BlockSpec((HID_DIM, OUT_PAD), lambda i: (0, 0)),  # w2: resident
            pl.BlockSpec((1, OUT_PAD), lambda i: (0, 0)),        # b2: resident
        ],
        out_specs=pl.BlockSpec((tile_b, OUT_PAD), lambda i: (i, 0)),
        compiler_params=pltpu.CompilerParams(
            dimension_semantics=("parallel",),   # shard batch over 2 TCs (v7x)
            vmem_limit_bytes=48 * 1024 * 1024,   # f32 x stream at tile_b=4096
        ),
    )(x2d, w1_bf, b1_2d, w2_pad, b2_pad)

    # Slice off lane / tail-row padding; logits back to f32 for the caller.
    return out[:B, :OUT_DIM].astype(jnp.float32)


def _torch_linear_init(key, fan_in, fan_out):
    """Mirror torch.nn.Linear init: U(-1/sqrt(fan_in), +1/sqrt(fan_in))."""
    kw, kb = jax.random.split(key)
    bound = 1.0 / (fan_in ** 0.5)
    # Weight stored as (fan_in, fan_out) so the kernel does x @ W directly
    # (equivalent to torch's x @ W.T with W of shape (fan_out, fan_in)).
    w = jax.random.uniform(kw, (fan_in, fan_out), jnp.float32, -bound, bound)
    b = jax.random.uniform(kb, (fan_out,), jnp.float32, -bound, bound)
    return w, b


def _reference_forward(x, w1, b1, w2, b2):
    B = x.size // IN_DIM
    x2d = x.reshape(B, IN_DIM)
    h = jnp.maximum(x2d @ w1 + b1, 0.0)
    return h @ w2 + b2


if __name__ == "__main__":
    key = jax.random.PRNGKey(0)
    k_x, k_fc1, k_fc2 = jax.random.split(key, 3)

    # Small MNIST-like batch: (B=2, C=1, H=28, W=28), NCHW.
    x = jax.random.normal(k_x, (2, 1, 28, 28), jnp.float32)

    w1, b1 = _torch_linear_init(k_fc1, IN_DIM, HID_DIM)
    w2, b2 = _torch_linear_init(k_fc2, HID_DIM, OUT_DIM)

    params = prepare_params(w1, b1, w2, b2)          # one-time prep
    fwd = jax.jit(simple_nn_forward)

    out = jax.block_until_ready(fwd(x, params))

    ref = _reference_forward(x, w1, b1, w2, b2)      # pure f32 reference
    assert out.shape == (2, 10)
    # Only fc1 inputs (x, W1) and the final store are bf16; accumulation,
    # hidden activation and fc2 are f32, so logits stay close to the f32 ref.
    assert jnp.allclose(out, ref, atol=2e-2, rtol=2e-2), (
        f"max abs err {jnp.max(jnp.abs(out - ref))}")

    print("KERNEL_OK")
</pallas_src>

<mosaic_0001>
module attributes {stable_mosaic.version = 11 : i64} {
  func.func @_mlp_kernel(%arg0: i32, %arg1: memref<16x784xf32, #tpu.memory_space<vmem>>, %arg2: memref<784x128xbf16, #tpu.memory_space<vmem>>, %arg3: memref<1x128xf32, #tpu.memory_space<vmem>>, %arg4: memref<128x128xf32, #tpu.memory_space<vmem>>, %arg5: memref<1x128xf32, #tpu.memory_space<vmem>>, %arg6: memref<16x128xbf16, #tpu.memory_space<vmem>>) attributes {dimension_semantics = [#tpu.dimension_semantics<parallel>], iteration_bounds = array<i64: 1>, scalar_prefetch = 0 : i64, scratch_operands = 0 : i64, tpu.core_type = #tpu.core_type<tc>, window_params = [{transform_indices = @transform_0, window_bounds = array<i64: 16, 784>}, {pipeline_mode = #tpu.pipeline_mode<synchronous>, transform_indices = @transform_1, window_bounds = array<i64: 784, 128>}, {pipeline_mode = #tpu.pipeline_mode<synchronous>, transform_indices = @transform_2, window_bounds = array<i64: 1, 128>}, {pipeline_mode = #tpu.pipeline_mode<synchronous>, transform_indices = @transform_3, window_bounds = array<i64: 128, 128>}, {pipeline_mode = #tpu.pipeline_mode<synchronous>, transform_indices = @transform_4, window_bounds = array<i64: 1, 128>}, {transform_indices = @transform_5, window_bounds = array<i64: 16, 128>}]} {
    %c0 = arith.constant 0 : index
    %c0_0 = arith.constant 0 : index
    %0 = vector.load %arg1[%c0, %c0_0] : memref<16x784xf32, #tpu.memory_space<vmem>>, vector<16x784xf32>
    %1 = arith.truncf %0 : vector<16x784xf32> to vector<16x784xbf16>
    %c0_1 = arith.constant 0 : index
    %c0_2 = arith.constant 0 : index
    %2 = vector.load %arg2[%c0_1, %c0_2] : memref<784x128xbf16, #tpu.memory_space<vmem>>, vector<784x128xbf16>
    %cst = arith.constant dense<0.000000e+00> : vector<16x128xf32>
    %3 = tpu.matmul %1, %2, %cst {dimension_numbers = #tpu.dot_dimension_numbers<[1], [0], [0], [1], [0, 0, 1, 1], [], []>} : vector<16x784xbf16>, vector<784x128xbf16>, vector<16x128xf32> -> vector<16x128xf32>
    %c0_3 = arith.constant 0 : index
    %c0_4 = arith.constant 0 : index
    %4 = vector.load %arg3[%c0_3, %c0_4] : memref<1x128xf32, #tpu.memory_space<vmem>>, vector<1x128xf32>
    %5 = vector.broadcast %4 : vector<1x128xf32> to vector<16x128xf32>
    %6 = arith.addf %3, %5 : vector<16x128xf32>
    %cst_5 = arith.constant 0.000000e+00 : f32
    %7 = vector.broadcast %cst_5 : f32 to vector<16x128xf32>
    %8 = arith.maximumf %6, %7 : vector<16x128xf32>
    %c0_6 = arith.constant 0 : index
    %c0_7 = arith.constant 0 : index
    %9 = vector.load %arg4[%c0_6, %c0_7] : memref<128x128xf32, #tpu.memory_space<vmem>>, vector<128x128xf32>
    %cst_8 = arith.constant dense<0.000000e+00> : vector<16x128xf32>
    %10 = tpu.matmul %8, %9, %cst_8 {dimension_numbers = #tpu.dot_dimension_numbers<[1], [0], [0], [1], [0, 0, 1, 1], [], []>} : vector<16x128xf32>, vector<128x128xf32>, vector<16x128xf32> -> vector<16x128xf32>
    %c0_9 = arith.constant 0 : index
    %c0_10 = arith.constant 0 : index
    %11 = vector.load %arg5[%c0_9, %c0_10] : memref<1x128xf32, #tpu.memory_space<vmem>>, vector<1x128xf32>
    %12 = vector.broadcast %11 : vector<1x128xf32> to vector<16x128xf32>
    %13 = arith.addf %10, %12 : vector<16x128xf32>
    %14 = arith.truncf %13 : vector<16x128xf32> to vector<16x128xbf16>
    %c0_11 = arith.constant 0 : index
    %c0_12 = arith.constant 0 : index
    %15 = vector.load %arg6[%c0_11, %c0_12] : memref<16x128xbf16, #tpu.memory_space<vmem>>, vector<16x128xbf16>
    tpu.vector_store %arg6[%c0_11, %c0_12], %14 {strides = array<i32>} : memref<16x128xbf16, #tpu.memory_space<vmem>>, vector<16x128xbf16>,
    return
  }
  func.func @transform_0(%arg0: i32) -> (i32, i32) {
    %c0_i32 = arith.constant 0 : i32
    %c0_i32_0 = arith.constant 0 : i32
    return %arg0, %c0_i32 : i32, i32
  }
  func.func @transform_1(%arg0: i32) -> (i32, i32) {
    %c0_i32 = arith.constant 0 : i32
    %c0_i32_0 = arith.constant 0 : i32
    %c0_i32_1 = arith.constant 0 : i32
    return %c0_i32, %c0_i32_0 : i32, i32
  }
  func.func @transform_2(%arg0: i32) -> (i32, i32) {
    %c0_i32 = arith.constant 0 : i32
    %c0_i32_0 = arith.constant 0 : i32
    %c0_i32_1 = arith.constant 0 : i32
    return %c0_i32, %c0_i32_0 : i32, i32
  }
  func.func @transform_3(%arg0: i32) -> (i32, i32) {
    %c0_i32 = arith.constant 0 : i32
    %c0_i32_0 = arith.constant 0 : i32
    %c0_i32_1 = arith.constant 0 : i32
    return %c0_i32, %c0_i32_0 : i32, i32
  }
  func.func @transform_4(%arg0: i32) -> (i32, i32) {
    %c0_i32 = arith.constant 0 : i32
    %c0_i32_0 = arith.constant 0 : i32
    %c0_i32_1 = arith.constant 0 : i32
    return %c0_i32, %c0_i32_0 : i32, i32
  }
  func.func @transform_5(%arg0: i32) -> (i32, i32) {
    %c0_i32 = arith.constant 0 : i32
    %c0_i32_0 = arith.constant 0 : i32
    return %arg0, %c0_i32 : i32, i32
  }
}

</mosaic_0001>

<bundles_post_ra>
// kernel: simple_nn_forward.1
= control target key start
LH: loop header
LB: loop body
LE: loop exit
PB: predicated region body
PF: predicated region fallthrough
CT: control target
= control target key end

     0   :  { %10 = vsyncpa [#allocation3], 0  ;;  %s1036_s18 = smov [#allocation2]   ;;  %s1182_s0 = inlined_call_operand.vmem [shape: f32[16,784], index: 0, kind: input, shape index: {}]   ;;  %s1183_s1 = inlined_call_operand.hbm [shape: bf16[784,128], index: 1, kind: input, shape index: {}]   ;;  %s1184_s2 = inlined_call_operand.vmem [shape: f32[1,128], index: 2, kind: input, shape index: {}]   ;;  %s1185_s3 = inlined_call_operand.vmem [shape: f32[128,128], index: 3, kind: input, shape index: {}]   ;;  %s1186_s4 = inlined_call_operand.vmem [shape: f32[1,128], index: 4, kind: input, shape index: {}]   ;;  %s1187_s5 = inlined_call_operand.vmem [shape: bf16[16,128], index: 5, kind: output, shape index: {}]  }
   0x1   :  { %s18_s19 = sshll.u32 %s1036_s18, 4  ;;  %s1012_s22 = scalar_lea.hbm %s1183_s1, 6272  ;;  %s19_s19 = int_to_ptr.vmem [resolvable:$true] %s18_s19 }
   0x2   :  { %p1013_p0 = scmp.ne.s32.totalorder %s1183_s1, %s1012_s22  ;;  %p1016_p1 = scmp.lt.u32.totalorder %s1012_s22, %s1183_s1 }
   0x4   :  { %p1018_p2 = pnand %p1016_p1, %p1013_p0 }
   0x6   :  { %1021 = shalt.err (!%p1018_p2)
}
   0x7   :  { %s1022_s27 = scalar_lea.vmem %s19_s19, 6272  ;;  %p1027_p4 = scmp.lt.s32.totalorder %s19_s19, %s19_s19 }
   0x8   :  { %p1023_p3 = scmp.ne.s32.totalorder %s19_s19, %s1022_s27  ;;  %p1028_p5 = scmp.lt.s32.totalorder %s1022_s27, %s1022_s27 }
   0xa   :  { %p1029_p6 = por %p1028_p5, %p1027_p4 }
   0xc   :  { %p1030_p7 = pnand %p1029_p6, %p1023_p3 }
   0xe   :  { %1033 = shalt.err (!%p1030_p7)
}
   0xf   :  { %s1037_s28 = smov 64   ;;  %s1038_s29 = smov 4  }
  0x10   :  { %24 = dma.hbm_to_vmem [thread:$0]  %s1183_s1, 6272, %s19_s19, [#allocation3], %s1037_s28, %s1037_s28, %s1038_s29  }
  0x11   :  { %1034 = dma.done.wait [#allocation3], 6272  }
  0x12   :  { %1035 = vsyncadd [#allocation3], 4294961024  ;;  %v963_v0 = vld [vmem:[#allocation2 + $0x40] sm:$0xff]   ;;  %v967_v4 = vld [vmem:[#allocation2 + $0x48] sm:$0xff]   ;;  %v1039_v43 = vmov 0.0   ;;  %vm1040_vm0 = vmmov 0  }
  0x13   :  { %v964_v1 = vld [vmem:[#allocation2] sm:$0xff]   ;;  %799 = vmatprep.subr.bf16.mxu0 %v963_v0  ;;  %v968_v5 = vld [vmem:[#allocation2 + $0x8] sm:$0xff]   ;;  %v971_v8 = vld [vmem:[#allocation2 + $0x50] sm:$0xff]   ;;  %vm455_vm1 = vcmask 130048  }
  0x14   :  { %v965_v2 = vld [vmem:[#allocation2 + $0xc0] sm:$0xff]   ;;  %800 = vmatpush3.bf16.msra.mxu0 %v964_v1  ;;  %v969_v6 = vld [vmem:[#allocation2 + $0xc8] sm:$0xff]   ;;  %v972_v9 = vld [vmem:[#allocation2 + $0x10] sm:$0xff]  }
  0x15   :  { %v966_v3 = vld [vmem:[#allocation2 + $0x80] sm:$0xff]   ;;  %821 = vmatprep.subr.bf16.mxu1 %v965_v2  ;;  %801 = vmatprep.subr.bf16.mxu0 %v967_v4  ;;  %v970_v7 = vld [vmem:[#allocation2 + $0x88] sm:$0xff]   ;;  %v973_v10 = vld [vmem:[#allocation2 + $0xd0] sm:$0xff]  }
  0x16   :  { %822 = vmatpush3.bf16.msra.mxu1 %v966_v3  ;;  %v974_v11 = vld [vmem:[#allocation2 + $0x90] sm:$0xff]   ;;  %v975_v12 = vld [vmem:[#allocation2 + $0x58] sm:$0xff]   ;;  %v979_v16 = vld [vmem:[#allocation2 + $0x60] sm:$0xff]  }
  0x17   :  { %823 = vmatprep.subr.bf16.mxu1 %v969_v6  ;;  %v976_v13 = vld [vmem:[#allocation2 + $0x18] sm:$0xff]   ;;  %v980_v17 = vld [vmem:[#allocation2 + $0x20] sm:$0xff]   ;;  %v983_v20 = vld [vmem:[#allocation2 + $0x68] sm:$0xff]  }
  0x18   :  { %802 = vmatpush3.bf16.msra.mxu0 %v968_v5  ;;  %v977_v14 = vld [vmem:[#allocation2 + $0xd8] sm:$0xff]   ;;  %v981_v18 = vld [vmem:[#allocation2 + $0xe0] sm:$0xff]   ;;  %v984_v21 = vld [vmem:[#allocation2 + $0x28] sm:$0xff]  }
  0x19   :  { %803 = vmatprep.subr.bf16.mxu0 %v971_v8  ;;  %v978_v15 = vld [vmem:[#allocation2 + $0x98] sm:$0xff]   ;;  %v982_v19 = vld [vmem:[#allocation2 + $0xa0] sm:$0xff]   ;;  %v985_v22 = vld [vmem:[#allocation2 + $0xe8] sm:$0xff]  }
  0x1a   :  { %824 = vmatpush3.bf16.msra.mxu1 %v970_v7  ;;  %v986_v23 = vld [vmem:[#allocation2 + $0xa8] sm:$0xff]   ;;  %v987_v24 = vld [vmem:[#allocation2 + $0x70] sm:$0xff]   ;;  %v991_v28 = vld [vmem:[#allocation2 + $0x78] sm:$0xff]  }
  0x1b   :  { %825 = vmatprep.subr.bf16.mxu1 %v973_v10  ;;  %v988_v25 = vld [vmem:[#allocation2 + $0x30] sm:$0xff]   ;;  %v992_v29 = vld [vmem:[#allocation2 + $0x38] sm:$0xff]   ;;  %v36_v31 = vld [vmem:[%s1182_s0 + $0x8] sm:$0xff] }
  0x1c   :  { %804 = vmatpush3.bf16.msra.mxu0 %v972_v9  ;;  %v989_v26 = vld [vmem:[#allocation2 + $0xf0] sm:$0xff]   ;;  %v993_v30 = vld [vmem:[#allocation2 + $0xf8] sm:$0xff]   ;;  %v43_v32 = vld [vmem:[%s1182_s0 + $0x40] sm:$0xff] }
  0x1d   :  { %805 = vmatprep.subr.bf16.mxu0 %v975_v12  ;;  %v990_v27 = vld [vmem:[#allocation2 + $0xb0] sm:$0xff]   ;;  %v50_v33 = vpack.c.bf16 %v43_v32, %v36_v31  ;;  %v994_v34 = vld [vmem:[#allocation2 + $0xb8] sm:$0xff]   ;;  %v35_v35 = vld [vmem:[%s1182_s0] sm:$0xff] }
  0x1e   :  { %826 = vmatpush3.bf16.msra.mxu1 %v974_v11  ;;  %v42_v36 = vld [vmem:[%s1182_s0 + $0x38] sm:$0xff]  ;;  %v995_v38 = vld [vmem:[#allocation2 + $0x140] sm:$0xff]   ;;  %v45_v40 = vld [vmem:[%s1182_s0 + $0x50] sm:$0xff] }
  0x1f   :  { %827 = vmatprep.subr.bf16.mxu1 %v977_v14  ;;  %491 = vmatprep.mubr.bf16.mxu0 %v50_v33  ;;  %v49_v37 = vpack.c.bf16 %v42_v36, %v35_v35  ;;  %v38_v39 = vld [vmem:[%s1182_s0 + $0x18] sm:$0xff]  ;;  %v996_v42 = vld [vmem:[#allocation2 + $0x100] sm:$0xff]   ;;  %v37_v44 = vld [vmem:[%s1182_s0 + $0x10] sm:$0xff] }
  0x20   :  { %806 = vmatpush3.bf16.msra.mxu0 %v976_v13  ;;  %v52_v41 = vpack.c.bf16 %v45_v40, %v38_v39  ;;  %v44_v45 = vld [vmem:[%s1182_s0 + $0x48] sm:$0xff]  ;;  %v999_v49 = vld [vmem:[#allocation2 + $0x150] sm:$0xff]   ;;  %v1001_v51 = vld [vmem:[#allocation2 + $0x158] sm:$0xff]  }
  0x21   :  { %807 = vmatprep.subr.bf16.mxu0 %v979_v16  ;;  %v51_v46 = vpack.c.bf16 %v44_v45, %v37_v44  ;;  %v997_v47 = vld [vmem:[#allocation2 + $0x148] sm:$0xff]   ;;  %v1000_v50 = vld [vmem:[#allocation2 + $0x110] sm:$0xff]   ;;  %v1002_v52 = vld [vmem:[#allocation2 + $0x118] sm:$0xff]  }
  0x22   :  { %828 = vmatpush3.bf16.msra.mxu1 %v978_v15  ;;  %532 = vmatprep.mubr.bf16.mxu1 %v52_v41  ;;  %v998_v48 = vld [vmem:[#allocation2 + $0x108] sm:$0xff]   ;;  %v1003_v53 = vld [vmem:[#allocation2 + $0x160] sm:$0xff]   ;;  %v41_v61 = vld [vmem:[%s1182_s0 + $0x30] sm:$0xff] }
  0x23   :  { %829 = vmatprep.subr.bf16.mxu1 %v981_v18  ;;  %v1004_v54 = vld [vmem:[#allocation2 + $0x120] sm:$0xff]   ;;  %v1005_v55 = vld [vmem:[#allocation2 + $0x168] sm:$0xff]   ;;  %v1007_v63 = vld [vmem:[#allocation2 + $0x170] sm:$0xff]  }
  0x24   :  { %808 = vmatpush3.bf16.msra.mxu0 %v980_v17  ;;  %v1011_v56 = vld [vmem:[#allocation2 + $0x180] sm:$0xff]   ;;  %v40_v57 = vld [vmem:[%s1182_s0 + $0x28] sm:$0xff]  ;;  %v1008_v1 = vld [vmem:[#allocation2 + $0x130] sm:$0xff]  }
  0x25   :  { %809 = vmatprep.subr.bf16.mxu0 %v983_v20  ;;  %v47_v58 = vld [vmem:[%s1182_s0 + $0x60] sm:$0xff]  ;;  %v1006_v59 = vld [vmem:[#allocation2 + $0x128] sm:$0xff]   ;;  %v1009_v2 = vld [vmem:[#allocation2 + $0x178] sm:$0xff]  }
  0x26   :  { %830 = vmatpush3.bf16.msra.mxu1 %v982_v19  ;;  %v54_v60 = vpack.c.bf16 %v47_v58, %v40_v57  ;;  %v48_v62 = vld [vmem:[%s1182_s0 + $0x68] sm:$0xff]  ;;  %v1010_v3 = vld [vmem:[#allocation2 + $0x138] sm:$0xff]   ;;  %v39_v4 = vld [vmem:[%s1182_s0 + $0x20] sm:$0xff] }
  0x27   :  { %831 = vmatprep.subr.bf16.mxu1 %v985_v22  ;;  %v55_v0 = vpack.c.bf16 %v48_v62, %v41_v61  ;;  %v46_v5 = vld [vmem:[%s1182_s0 + $0x58] sm:$0xff]  ;;  %v625_v7 = vld [vmem:[%s1185_s3] sm:$0xff]  ;;  %v626_v8 = vld [vmem:[%s1185_s3 + $0x8] sm:$0xff] }
  0x28   :  { %810 = vmatpush3.bf16.msra.mxu0 %v984_v21  ;;  %v53_v6 = vpack.c.bf16 %v46_v5, %v39_v4  ;;  %v627_v9 = vld [vmem:[%s1185_s3 + $0x10] sm:$0xff]  ;;  %v926_v10 = vpack.c.bf16 %v626_v8, %v625_v7  ;;  %v628_v11 = vld [vmem:[%s1185_s3 + $0x18] sm:$0xff]  ;;  %v629_v13 = vld [vmem:[%s1185_s3 + $0x20] sm:$0xff] }
  0x29   :  { %811 = vmatprep.subr.bf16.mxu0 %v987_v24  ;;  %v930_v12 = vpack.c.bf16 %v628_v11, %v627_v9  ;;  %v630_v14 = vld [vmem:[%s1185_s3 + $0x28] sm:$0xff]  ;;  %v631_v16 = vld [vmem:[%s1185_s3 + $0x30] sm:$0xff]  ;;  %v632_v17 = vld [vmem:[%s1185_s3 + $0x38] sm:$0xff] }
  0x2a   :  { %832 = vmatpush3.bf16.msra.mxu1 %v986_v23  ;;  %v934_v15 = vpack.c.bf16 %v630_v14, %v629_v13  ;;  %v938_v18 = vpack.c.bf16 %v632_v17, %v631_v16  ;;  %v633_v19 = vld [vmem:[%s1185_s3 + $0x40] sm:$0xff]  ;;  %v634_v20 = vld [vmem:[%s1185_s3 + $0x48] sm:$0xff]  ;;  %v635_v22 = vld [vmem:[%s1185_s3 + $0x50] sm:$0xff] }
  0x2b   :  { %833 = vmatprep.subr.bf16.mxu1 %v989_v26  ;;  %v942_v21 = vpack.c.bf16 %v634_v20, %v633_v19  ;;  %v636_v23 = vld [vmem:[%s1185_s3 + $0x58] sm:$0xff]  ;;  %v638_v26 = vld [vmem:[%s1185_s3 + $0x68] sm:$0xff]  ;;  %v738_v32 = vld [vmem:[%s1184_s2] ss:$0 sm:$0xff] }
  0x2c   :  { %812 = vmatpush3.bf16.msra.mxu0 %v988_v25  ;;  %v946_v24 = vpack.c.bf16 %v636_v23, %v635_v22  ;;  %v637_v25 = vld [vmem:[%s1185_s3 + $0x60] sm:$0xff] }
  0x2d   :  { %813 = vmatprep.subr.bf16.mxu0 %v991_v28  ;;  %v639_v28 = vld [vmem:[%s1185_s3 + $0x70] sm:$0xff] }
  0x2e   :  { %834 = vmatpush3.bf16.msra.mxu1 %v990_v27  ;;  %v950_v27 = vpack.c.bf16 %v638_v26, %v637_v25 }
  0x2f   :  { %835 = vmatprep.subr.bf16.mxu1 %v993_v30 }
  0x30   :  { %814 = vmatpush3.bf16.msra.mxu0 %v992_v29  ;;  %v640_v29 = vld [vmem:[%s1185_s3 + $0x78] sm:$0xff] }
  0x31   :  { %843 = vmatprep.subr.bf16.mxu0 %v995_v38  ;;  %v954_v30 = vpack.c.bf16 %v640_v29, %v639_v28 }
  0x32   :  { %836 = vmatpush3.bf16.msra.mxu1 %v994_v34 }
  0x33   :  { %885 = vmatprep.subr.bf16.mxu1 %v1039_v43  ;;  %492 = vmatmul.mubr.bf16.vlgmr.msra.gmra.mrb[0].mxu0 %v49_v37 }
  0x34   :  { %844 = vmatpush3.bf16.msra.mxu0 %v996_v42  ;;  %573 = vmatprep.mubr.bf16.mxu0 %v54_v60 }
  0x35   :  { %533 = vmatmul.mubr.bf16.vlgmr.msra.gmra.mrb[0].mxu1 %v51_v46  ;;  %845 = vmatprep.subr.bf16.mxu0 %v997_v47 }
  0x36   :  { %887 = vmatprep.mubr.msk.bf16.mxu1 %vm1040_vm0, %v1039_v43  ;;  %886 = vmatpush3.bf16.msra.mxu1 %v1011_v56 }
  0x37   :  { %927 = vmatprep.subr.bf16.mxu1 %v926_v10 }
  0x38   :  { %846 = vmatpush3.bf16.msra.mxu0 %v998_v48 }
  0x39   :  { %847 = vmatprep.subr.bf16.mxu0 %v999_v49 }
  0x3c   :  { %848 = vmatpush3.bf16.msra.mxu0 %v1000_v50 }
  0x3d   :  { %849 = vmatprep.subr.bf16.mxu0 %v1001_v51  ;;  %888 = vmatmul.mubr.msk.bf16.vlgmr.msra.gmra.mrb[4].mxu1 %vm455_vm1, %v55_v0  ;;  %v789_v0 = vld [vmem:[%s1186_s4] ss:$0 sm:$0xff] }
  0x3e   :  { %929 = vmatpush3.bf16.msra.mxu1 %v926_v10 }
  0x3f   :  { %931 = vmatprep.subr.bf16.mxu1 %v930_v12 }
  0x40   :  { %850 = vmatpush3.bf16.msra.mxu0 %v1002_v52 }
  0x41   :  { %851 = vmatprep.subr.bf16.mxu0 %v1003_v53 }
  0x42   :  { %933 = vmatpush3.bf16.msra.mxu1 %v930_v12 }
  0x43   :  { %935 = vmatprep.subr.bf16.mxu1 %v934_v15 }
  0x44   :  { %852 = vmatpush3.bf16.msra.mxu0 %v1004_v54 }
  0x45   :  { %853 = vmatprep.subr.bf16.mxu0 %v1005_v55 }
  0x46   :  { %937 = vmatpush3.bf16.msra.mxu1 %v934_v15 }
  0x47   :  { %939 = vmatprep.subr.bf16.mxu1 %v938_v18 }
  0x48   :  { %854 = vmatpush3.bf16.msra.mxu0 %v1006_v59 }
  0x49   :  { %855 = vmatprep.subr.bf16.mxu0 %v1007_v63 }
  0x4a   :  { %941 = vmatpush3.bf16.msra.mxu1 %v938_v18 }
  0x4b   :  { %943 = vmatprep.subr.bf16.mxu1 %v942_v21 }
  0x4c   :  { %856 = vmatpush3.bf16.msra.mxu0 %v1008_v1 }
  0x4d   :  { %857 = vmatprep.subr.bf16.mxu0 %v1009_v2 }
  0x4e   :  { %945 = vmatpush3.bf16.msra.mxu1 %v942_v21 }
  0x4f   :  { %947 = vmatprep.subr.bf16.mxu1 %v946_v24 }
  0x50   :  { %858 = vmatpush3.bf16.msra.mxu0 %v1010_v3 }
  0x52   :  { %949 = vmatpush3.bf16.msra.mxu1 %v946_v24 }
  0x53   :  { %574 = vmatmul.mubr.bf16.vlgmr.msra.gmra.mrb[4].mxu0 %v53_v6  ;;  %951 = vmatprep.subr.bf16.mxu1 %v950_v27 }
  0x56   :  { %953 = vmatpush3.bf16.msra.mxu1 %v950_v27 }
  0x57   :  { %955 = vmatprep.subr.bf16.mxu1 %v954_v30 }
  0x5a   :  { %957 = vmatpush3.bf16.msra.mxu1 %v954_v30 }
 0x106   :  { %v815_v31 = vpop.f32.mrb[0].mxu0 }
 0x107   :  { %v816_v33 = vpop.f32.mrb[1].mxu0 }
 0x108   :  { %v817_v34 = vadd.f32 %v816_v33, %v815_v31  ;;  %v818_v35 = vpop.f32.mrb[2].mxu0  ;;  %v837_v36 = vpop.f32.mrb[0].mxu1 }
 0x109   :  { %v819_v37 = vpop.f32.mrb[3].mxu0  ;;  %v838_v40 = vpop.f32.mrb[1].mxu1 }
 0x10a   :  { %v494_v38 = vadd.f32 %v817_v34, %v738_v32  ;;  %v820_v39 = vadd.f32 %v819_v37, %v818_v35  ;;  %v839_v41 = vadd.f32 %v838_v40, %v837_v36  ;;  %v840_v42 = vpop.f32.mrb[2].mxu1 }
 0x10b   :  { %v841_v44 = vpop.f32.mrb[3].mxu1 }
 0x10c   :  { %v497_v43 = vadd.f32 %v820_v39, %v738_v32  ;;  %v535_v45 = vadd.f32 %v839_v41, %v494_v38  ;;  %v842_v46 = vadd.f32 %v841_v44, %v840_v42 }
 0x10e   :  { %v538_v47 = vadd.f32 %v842_v46, %v497_v43 }
 0x110   :  { %v616_v48 = vpop.f32.mrb[4].mxu1 }
 0x111   :  { %v889_v49 = vpop.f32.mrb[5].mxu1 }
 0x112   :  { %v619_v50 = vpop.f32.mrb[6].mxu1 }
 0x113   :  { %v890_v51 = vpop.f32.mrb[7].mxu1 }
 0x126   :  { %v859_v52 = vpop.f32.mrb[4].mxu0 }
 0x127   :  { %v860_v53 = vpop.f32.mrb[5].mxu0 }
 0x128   :  { %v861_v54 = vadd.f32 %v860_v53, %v859_v52  ;;  %v862_v55 = vpop.f32.mrb[6].mxu0 }
 0x129   :  { %v863_v56 = vpop.f32.mrb[7].mxu0 }
 0x12a   :  { %v576_v57 = vadd.f32 %v861_v54, %v535_v45  ;;  %v864_v58 = vadd.f32 %v863_v56, %v862_v55 }
 0x12c   :  { %v617_v59 = vadd.f32 %v616_v48, %v576_v57  ;;  %v579_v60 = vadd.f32 %v864_v58, %v538_v47 }
 0x12e   :  { %v623_v61 = vmax.f32 %v617_v59, 0.0  ;;  %v620_v62 = vadd.f32 %v619_v50, %v579_v60 }
 0x130   :  { %v624_v63 = vmax.f32 %v620_v62, 0.0  ;;  %923 = vmatprep.mubr.f32.mxu1 %v623_v61 }
 0x132   :  { %924 = vmatmul.mubr.f32.vlgmr.msra.gmra.mrb[8].mxu1 %v624_v63 }
 0x205   :  { %v925_v1 = vpop.f32.mrb[8].mxu1 }
 0x206   :  { %v720_v2 = vadd.f32 %v925_v1, %v789_v0  ;;  %v714_v3 = vpop.f32.mrb[9].mxu1 }
 0x207   :  { %v715_v4 = vadd.f32 %v789_v0, %v714_v3 }
 0x209   :  { %v797_v5 = vpack.c.bf16 %v720_v2, %v715_v4 }
 0x20b   :  { %798 = vst [vmem:[%s1187_s5] sm:$0xff] %v797_v5  }
 0x20c   :  { %737 = vsyncpa [#allocation3], 1 }

</bundles_post_ra>
